<compile_context>
chip_gen: v7x
topology: tpu7x:2x2x1
jax: 0.10.0
libtpu: 0.0.40
codegen_flags: <defaults>
</compile_context>

<pallas_src>
import jax
import jax.numpy as jnp
from jax.experimental import pallas as pl
from jax.experimental.pallas import tpu as pltpu

EPS = 1e-5


def _sublane_unit(dtype):
    """Minimum sublane tile for a dtype: 8 for 4-byte, 16 for 2-byte, 32 for 1-byte."""
    return max(8, 32 // dtype.itemsize)


def _bn1d_kernel(n_ref,                                   # SMEM (1,) int32: true batch size
                 x_ref, scale_ref, shift_ref, rmean_ref, rvar_ref,
                 y_ref, new_rmean_ref, new_rvar_ref,
                 c_acc, sum_acc, sumsq_acc):
    ni = pl.program_id(1)                                 # batch (reduction) axis, last in grid
    tn = x_ref.shape[0]
    n = n_ref[0]

    xf = x_ref[...].astype(jnp.float32)                   # (tn, tf)

    # Normalization uses only the pre-folded scale/shift (independent of batch stats),
    # so it is emitted every step: f32 FMA, single cast at the (lane-dense) store.
    y_ref[...] = (xf * scale_ref[...] + shift_ref[...]).astype(y_ref.dtype)

    @pl.when(ni == 0)
    def _init():
        c_acc[...] = xf[0:1, :]                           # per-column shift; row 0 always valid
        sum_acc[...] = jnp.zeros_like(sum_acc)
        sumsq_acc[...] = jnp.zeros_like(sumsq_acc)

    # Ragged-N tail: rows >= N must not contribute to the statistics (their y writes are
    # already dropped by Pallas' block masking).
    row_ids = jax.lax.broadcasted_iota(jnp.int32, (tn, 1), 0) + ni * tn
    d = jnp.where(row_ids < n, xf - c_acc[...], 0.0)      # shifted one-pass accumulation

    if sum_acc.shape[0] == 8:                             # tn is a multiple of 8 (common case)
        d3 = d.reshape(tn // 8, 8, d.shape[1])            # sublane split -> pure VPU adds
        sum_acc[...] += jnp.sum(d3, axis=0)
        sumsq_acc[...] += jnp.sum(d3 * d3, axis=0)
    else:                                                 # small N not a multiple of 8
        sum_acc[...] += jnp.sum(d, axis=0, keepdims=True)
        sumsq_acc[...] += jnp.sum(d * d, axis=0, keepdims=True)

    @pl.when(ni == pl.num_programs(1) - 1)
    def _finalize():
        s = jnp.sum(sum_acc[...], axis=0, keepdims=True)      # 8 -> 1 reduce, once per F tile
        ss = jnp.sum(sumsq_acc[...], axis=0, keepdims=True)
        n_f = n.astype(jnp.float32)
        mean = c_acc[...] + s / n_f
        # torch.var default is unbiased (/(N-1)); N == 1 divides by zero (NaN), as in torch.
        var = (ss - s * s / n_f) / (n_f - 1.0)
        new_rmean_ref[...] = (0.1 * rmean_ref[...].astype(jnp.float32)
                              + 0.9 * mean).astype(new_rmean_ref.dtype)
        new_rvar_ref[...] = (0.1 * rvar_ref[...].astype(jnp.float32)
                             + 0.9 * var).astype(new_rvar_ref.dtype)


def batchnorm1d_forward(x, rm, rv, weight, bias, running_mean, running_var,
                        *, tn_target=1024, tf_target=512):
    """Returns (y, new_running_mean, new_running_var).  x is (N, F)."""
    N, F = x.shape

    # Fold affine params + ORIGINAL rm/rv into one f32 (scale, shift) pair once
    # (tiny (1, F) op), so the per-tile hot path is a single FMA.
    inv_std = jax.lax.rsqrt(rv.astype(jnp.float32) + EPS)
    w32 = weight.astype(jnp.float32)
    scale = (w32 * inv_std).reshape(1, F)
    shift = (bias.astype(jnp.float32) - rm.astype(jnp.float32) * w32 * inv_std).reshape(1, F)
    rmean = running_mean.reshape(1, F)
    rvar = running_var.reshape(1, F)

    # --- tile selection: no padding, no copies -------------------------------------
    # Lane axis: full F when it fits (one contiguous HBM slab per tile), else a
    # 128-multiple tile with a ragged tail (handled by Pallas' masked block writes).
    tf_target = max(128, (tf_target // 128) * 128)
    tf = F if F <= tf_target else tf_target
    # Sublane axis: dtype-dependent unit; tn never collapses for awkward N -- the
    # ragged tail is masked inside the kernel against the true N (held in SMEM).
    unit = _sublane_unit(x.dtype)
    tn_target = max(unit, (tn_target // unit) * unit)
    tn = N if N <= tn_target else tn_target

    grid = (pl.cdiv(F, tf), pl.cdiv(N, tn))   # F tiles (parallel), N tiles (reduction, last)
    # TODO(synk): on v7x, when grid[0] == 1 the second TensorCore idles; split the N axis
    # across the two cores and combine per-core partial sum/sumsq to use the megacore.

    acc_rows = 8 if tn % 8 == 0 else 1

    x_spec = pl.BlockSpec((tn, tf), lambda fj, ni, n_ref: (ni, fj))
    row_spec = pl.BlockSpec((1, tf), lambda fj, ni, n_ref: (0, fj))  # resident across N steps

    grid_spec = pltpu.PrefetchScalarGridSpec(
        num_scalar_prefetch=1,                # true N lives in SMEM (masking + divisors)
        grid=grid,
        in_specs=[x_spec, row_spec, row_spec, row_spec, row_spec],
        out_specs=[x_spec, row_spec, row_spec],
        scratch_shapes=[pltpu.VMEM((1, tf), jnp.float32),           # per-column shift c
                        pltpu.VMEM((acc_rows, tf), jnp.float32),    # sum(x - c)
                        pltpu.VMEM((acc_rows, tf), jnp.float32)],   # sum((x - c)^2)
    )

    out_shape = (
        jax.ShapeDtypeStruct((N, F), x.dtype),
        jax.ShapeDtypeStruct((1, F), running_mean.dtype),
        jax.ShapeDtypeStruct((1, F), running_var.dtype),
    )

    # Residency estimate: x + y, each double-buffered.  >= 32 MiB raises v5e's 16 MiB
    # scoped default; <= 64 MiB stays inside v7x's 64 MiB physical VMEM.
    resid = 4 * tn * tf * x.dtype.itemsize
    vmem_limit = int(min(64 << 20, max(32 << 20, 2 * resid)))

    n_smem = jnp.array([N], dtype=jnp.int32)

    y, new_rm, new_rv = pl.pallas_call(
        _bn1d_kernel,
        grid_spec=grid_spec,
        out_shape=out_shape,
        compiler_params=pltpu.CompilerParams(
            dimension_semantics=("parallel", "arbitrary"),
            vmem_limit_bytes=vmem_limit),
        # NOTE: input_output_aliases (x -> y) would halve the activation HBM footprint,
        # but it donates the caller's x buffer; left off so x stays usable afterwards.
    )(n_smem, x, scale, shift, rmean, rvar)

    return y, new_rm, new_rv


def batchnorm1d_reference(x, rm, rv, weight, bias, running_mean, running_var):
    mean = jnp.mean(x, axis=0, keepdims=True)
    var = jnp.var(x, axis=0, ddof=1, keepdims=True)
    new_rm = 0.1 * running_mean + 0.9 * mean
    new_rv = 0.1 * running_var + 0.9 * var
    y = (x - rm) / jnp.sqrt(rv + EPS) * weight + bias
    return y, new_rm, new_rv


def _check(x, rm, rv, weight, bias, running_mean, running_var, **kw):
    y, nrm, nrv = batchnorm1d_forward(x, rm, rv, weight, bias,
                                      running_mean, running_var, **kw)
    jax.block_until_ready((y, nrm, nrv))
    y_r, rm_r, rv_r = batchnorm1d_reference(x, rm, rv, weight, bias,
                                            running_mean, running_var)
    assert y.shape == x.shape and y.dtype == x.dtype
    assert jnp.allclose(y, y_r, atol=1e-5, rtol=1e-5)
    assert jnp.allclose(nrm, rm_r, atol=1e-5, rtol=1e-5)
    assert jnp.allclose(nrv, rv_r, atol=1e-5, rtol=1e-5)


if __name__ == "__main__":
    key = jax.random.PRNGKey(0)
    k0, k1, k2, k3, k4, k5, k6, k7, k8 = jax.random.split(key, 9)

    # --- Case 1: the module's default init (matches __init__), small shapes ----------
    N, F = 8, 32
    x = jax.random.normal(k0, (N, F), dtype=jnp.float32)
    weight = jnp.ones((1, F), dtype=jnp.float32)          # nn.Parameter ones
    bias = jnp.zeros((1, F), dtype=jnp.float32)           # nn.Parameter zeros
    rm = jnp.ones((1, F), dtype=jnp.float32)              # self.rm
    rv = jnp.zeros((1, F), dtype=jnp.float32)             # self.rv
    running_mean = jnp.ones((1, F), dtype=jnp.float32)    # registered buffer
    running_var = jnp.zeros((1, F), dtype=jnp.float32)    # registered buffer
    _check(x, rm, rv, weight, bias, running_mean, running_var)

    # --- Case 2: unaligned N and F, tiny tile targets -> multi-step cdiv grid with a
    #             masked ragged N tail and a ragged F tail (no padding anywhere) ------
    N2, F2 = 30, 200
    x2 = jax.random.normal(k1, (N2, F2), dtype=jnp.float32) + 3.0   # nonzero mean
    w2 = jax.random.normal(k2, (1, F2), dtype=jnp.float32)
    b2 = jax.random.normal(k3, (1, F2), dtype=jnp.float32)
    rm2 = jax.random.normal(k4, (1, F2), dtype=jnp.float32)
    rv2 = jnp.abs(jax.random.normal(k5, (1, F2), dtype=jnp.float32)) + 0.5
    rmean2 = jax.random.normal(k6, (1, F2), dtype=jnp.float32)
    rvar2 = jnp.abs(jax.random.normal(k7, (1, F2), dtype=jnp.float32))
    _check(x2, rm2, rv2, w2, b2, rmean2, rvar2, tn_target=8, tf_target=128)

    # --- Case 3: default targets, N not a multiple of 8 (full-N tile, single-row acc) -
    N3, F3 = 13, 200
    x3 = jax.random.normal(k8, (N3, F3), dtype=jnp.float32)
    _check(x3, rm2, rv2, w2, b2, rmean2, rvar2)

    print("KERNEL_OK")
</pallas_src>

<mosaic_0001>
module attributes {stable_mosaic.version = 11 : i64} {
  func.func @_bn1d_kernel(%arg0: i32, %arg1: i32, %arg2: memref<1xi32, #tpu.memory_space<smem>>, %arg3: memref<8x32xf32, #tpu.memory_space<vmem>>, %arg4: memref<1x32xf32, #tpu.memory_space<vmem>>, %arg5: memref<1x32xf32, #tpu.memory_space<vmem>>, %arg6: memref<1x32xf32, #tpu.memory_space<vmem>>, %arg7: memref<1x32xf32, #tpu.memory_space<vmem>>, %arg8: memref<8x32xf32, #tpu.memory_space<vmem>>, %arg9: memref<1x32xf32, #tpu.memory_space<vmem>>, %arg10: memref<1x32xf32, #tpu.memory_space<vmem>>, %arg11: memref<1x32xf32, #tpu.memory_space<vmem>>, %arg12: memref<8x32xf32, #tpu.memory_space<vmem>>, %arg13: memref<8x32xf32, #tpu.memory_space<vmem>>) attributes {dimension_semantics = [#tpu.dimension_semantics<parallel>, #tpu.dimension_semantics<arbitrary>], iteration_bounds = array<i64: 1, 1>, scalar_prefetch = 1 : i64, scratch_operands = 3 : i64, tpu.core_type = #tpu.core_type<tc>, window_params = [{transform_indices = @transform_0, window_bounds = array<i64: 8, 32>}, {transform_indices = @transform_1, window_bounds = array<i64: 1, 32>}, {transform_indices = @transform_2, window_bounds = array<i64: 1, 32>}, {transform_indices = @transform_3, window_bounds = array<i64: 1, 32>}, {transform_indices = @transform_4, window_bounds = array<i64: 1, 32>}, {transform_indices = @transform_5, window_bounds = array<i64: 8, 32>}, {transform_indices = @transform_6, window_bounds = array<i64: 1, 32>}, {transform_indices = @transform_7, window_bounds = array<i64: 1, 32>}]} {
    %c0 = arith.constant 0 : index
    %0 = memref.load %arg2[%c0] : memref<1xi32, #tpu.memory_space<smem>>
    %c0_0 = arith.constant 0 : index
    %c0_1 = arith.constant 0 : index
    %1 = vector.load %arg3[%c0_0, %c0_1] : memref<8x32xf32, #tpu.memory_space<vmem>>, vector<8x32xf32>
    %c0_2 = arith.constant 0 : index
    %c0_3 = arith.constant 0 : index
    %2 = vector.load %arg4[%c0_2, %c0_3] : memref<1x32xf32, #tpu.memory_space<vmem>>, vector<1x32xf32>
    %3 = vector.broadcast %2 : vector<1x32xf32> to vector<8x32xf32>
    %4 = arith.mulf %1, %3 : vector<8x32xf32>
    %c0_4 = arith.constant 0 : index
    %c0_5 = arith.constant 0 : index
    %5 = vector.load %arg5[%c0_4, %c0_5] : memref<1x32xf32, #tpu.memory_space<vmem>>, vector<1x32xf32>
    %6 = vector.broadcast %5 : vector<1x32xf32> to vector<8x32xf32>
    %7 = arith.addf %4, %6 : vector<8x32xf32>
    %c0_6 = arith.constant 0 : index
    %c0_7 = arith.constant 0 : index
    %8 = vector.load %arg8[%c0_6, %c0_7] : memref<8x32xf32, #tpu.memory_space<vmem>>, vector<8x32xf32>
    tpu.vector_store %arg8[%c0_6, %c0_7], %7 {strides = array<i32>} : memref<8x32xf32, #tpu.memory_space<vmem>>, vector<8x32xf32>,
    %c0_i32 = arith.constant 0 : i32
    %9 = arith.cmpi eq, %arg1, %c0_i32 : i32
    %10 = arith.extui %9 : i1 to i32
    %c0_i32_8 = arith.constant 0 : i32
    %11 = arith.cmpi ne, %10, %c0_i32_8 : i32
    scf.if %11 {
      %38 = vector.extract_strided_slice %1 {offsets = [0, 0], sizes = [1, 32], strides = [1, 1]} : vector<8x32xf32> to vector<1x32xf32>
      %c0_23 = arith.constant 0 : index
      %c0_24 = arith.constant 0 : index
      %39 = vector.load %arg11[%c0_23, %c0_24] : memref<1x32xf32, #tpu.memory_space<vmem>>, vector<1x32xf32>
      tpu.vector_store %arg11[%c0_23, %c0_24], %38 {strides = array<i32>} : memref<1x32xf32, #tpu.memory_space<vmem>>, vector<1x32xf32>,
      %cst_25 = arith.constant 0.000000e+00 : f32
      %40 = vector.broadcast %cst_25 : f32 to vector<8x32xf32>
      %c0_26 = arith.constant 0 : index
      %c0_27 = arith.constant 0 : index
      %41 = vector.load %arg12[%c0_26, %c0_27] : memref<8x32xf32, #tpu.memory_space<vmem>>, vector<8x32xf32>
      tpu.vector_store %arg12[%c0_26, %c0_27], %40 {strides = array<i32>} : memref<8x32xf32, #tpu.memory_space<vmem>>, vector<8x32xf32>,
      %cst_28 = arith.constant 0.000000e+00 : f32
      %42 = vector.broadcast %cst_28 : f32 to vector<8x32xf32>
      %c0_29 = arith.constant 0 : index
      %c0_30 = arith.constant 0 : index
      %43 = vector.load %arg13[%c0_29, %c0_30] : memref<8x32xf32, #tpu.memory_space<vmem>>, vector<8x32xf32>
      tpu.vector_store %arg13[%c0_29, %c0_30], %42 {strides = array<i32>} : memref<8x32xf32, #tpu.memory_space<vmem>>, vector<8x32xf32>,
    } else {
    }
    %12 = tpu.iota {dimensions = array<i32: 0>} : vector<8x1xi32>
    %c8_i32 = arith.constant 8 : i32
    %13 = arith.muli %arg1, %c8_i32 : i32
    %14 = vector.broadcast %13 : i32 to vector<8x1xi32>
    %15 = arith.addi %12, %14 : vector<8x1xi32>
    %16 = vector.broadcast %0 : i32 to vector<8x1xi32>
    %17 = arith.cmpi slt, %15, %16 : vector<8x1xi32>
    %c0_9 = arith.constant 0 : index
    %c0_10 = arith.constant 0 : index
    %18 = vector.load %arg11[%c0_9, %c0_10] : memref<1x32xf32, #tpu.memory_space<vmem>>, vector<1x32xf32>
    %19 = vector.broadcast %18 : vector<1x32xf32> to vector<8x32xf32>
    %20 = arith.subf %1, %19 : vector<8x32xf32>
    %cst = arith.constant 0.000000e+00 : f32
    %21 = vector.shape_cast %17 : vector<8x1xi1> to vector<8x1xi1>
    %22 = vector.broadcast %21 : vector<8x1xi1> to vector<8x32xi1>
    %23 = vector.broadcast %cst : f32 to vector<8x32xf32>
    %24 = arith.select %22, %20, %23 : vector<8x32xi1>, vector<8x32xf32>
    %25 = vector.shape_cast %24 : vector<8x32xf32> to vector<1x8x32xf32>
    %c0_11 = arith.constant 0 : index
    %c0_12 = arith.constant 0 : index
    %26 = vector.load %arg12[%c0_11, %c0_12] : memref<8x32xf32, #tpu.memory_space<vmem>>, vector<8x32xf32>
    %cst_13 = arith.constant dense<0.000000e+00> : vector<8x32xf32>
    %27 = vector.multi_reduction <add>, %25, %cst_13 [0] : vector<1x8x32xf32> to vector<8x32xf32>
    %28 = arith.addf %26, %27 : vector<8x32xf32>
    %c0_14 = arith.constant 0 : index
    %c0_15 = arith.constant 0 : index
    %29 = vector.load %arg12[%c0_14, %c0_15] : memref<8x32xf32, #tpu.memory_space<vmem>>, vector<8x32xf32>
    tpu.vector_store %arg12[%c0_14, %c0_15], %28 {strides = array<i32>} : memref<8x32xf32, #tpu.memory_space<vmem>>, vector<8x32xf32>,
    %c0_16 = arith.constant 0 : index
    %c0_17 = arith.constant 0 : index
    %30 = vector.load %arg13[%c0_16, %c0_17] : memref<8x32xf32, #tpu.memory_space<vmem>>, vector<8x32xf32>
    %31 = arith.mulf %25, %25 : vector<1x8x32xf32>
    %cst_18 = arith.constant dense<0.000000e+00> : vector<8x32xf32>
    %32 = vector.multi_reduction <add>, %31, %cst_18 [0] : vector<1x8x32xf32> to vector<8x32xf32>
    %33 = arith.addf %30, %32 : vector<8x32xf32>
    %c0_19 = arith.constant 0 : index
    %c0_20 = arith.constant 0 : index
    %34 = vector.load %arg13[%c0_19, %c0_20] : memref<8x32xf32, #tpu.memory_space<vmem>>, vector<8x32xf32>
    tpu.vector_store %arg13[%c0_19, %c0_20], %33 {strides = array<i32>} : memref<8x32xf32, #tpu.memory_space<vmem>>, vector<8x32xf32>,
    %c0_i32_21 = arith.constant 0 : i32
    %35 = arith.cmpi eq, %arg1, %c0_i32_21 : i32
    %36 = arith.extui %35 : i1 to i32
    %c0_i32_22 = arith.constant 0 : i32
    %37 = arith.cmpi ne, %36, %c0_i32_22 : i32
    scf.if %37 {
      %c0_23 = arith.constant 0 : index
      %c0_24 = arith.constant 0 : index
      %38 = vector.load %arg12[%c0_23, %c0_24] : memref<8x32xf32, #tpu.memory_space<vmem>>, vector<8x32xf32>
      %cst_25 = arith.constant dense<0.000000e+00> : vector<32xf32>
      %39 = vector.multi_reduction <add>, %38, %cst_25 [0] : vector<8x32xf32> to vector<32xf32>
      %40 = vector.shape_cast %39 : vector<32xf32> to vector<1x32xf32>
      %c0_26 = arith.constant 0 : index
      %c0_27 = arith.constant 0 : index
      %41 = vector.load %arg13[%c0_26, %c0_27] : memref<8x32xf32, #tpu.memory_space<vmem>>, vector<8x32xf32>
      %cst_28 = arith.constant dense<0.000000e+00> : vector<32xf32>
      %42 = vector.multi_reduction <add>, %41, %cst_28 [0] : vector<8x32xf32> to vector<32xf32>
      %43 = vector.shape_cast %42 : vector<32xf32> to vector<1x32xf32>
      %44 = arith.sitofp %0 : i32 to f32
      %c0_29 = arith.constant 0 : index
      %c0_30 = arith.constant 0 : index
      %45 = vector.load %arg11[%c0_29, %c0_30] : memref<1x32xf32, #tpu.memory_space<vmem>>, vector<1x32xf32>
      %46 = vector.broadcast %44 : f32 to vector<1x32xf32>
      %47 = arith.divf %40, %46 : vector<1x32xf32>
      %48 = arith.addf %45, %47 : vector<1x32xf32>
      %49 = arith.mulf %40, %40 : vector<1x32xf32>
      %50 = vector.broadcast %44 : f32 to vector<1x32xf32>
      %51 = arith.divf %49, %50 : vector<1x32xf32>
      %52 = arith.subf %43, %51 : vector<1x32xf32>
      %cst_31 = arith.constant 1.000000e+00 : f32
      %53 = arith.subf %44, %cst_31 : f32
      %54 = vector.broadcast %53 : f32 to vector<1x32xf32>
      %55 = arith.divf %52, %54 : vector<1x32xf32>
      %c0_32 = arith.constant 0 : index
      %c0_33 = arith.constant 0 : index
      %56 = vector.load %arg6[%c0_32, %c0_33] : memref<1x32xf32, #tpu.memory_space<vmem>>, vector<1x32xf32>
      %cst_34 = arith.constant 1.000000e-01 : f32
      %57 = vector.broadcast %cst_34 : f32 to vector<1x32xf32>
      %58 = arith.mulf %57, %56 : vector<1x32xf32>
      %cst_35 = arith.constant 0.899999976 : f32
      %59 = vector.broadcast %cst_35 : f32 to vector<1x32xf32>
      %60 = arith.mulf %59, %48 : vector<1x32xf32>
      %61 = arith.addf %58, %60 : vector<1x32xf32>
      %c0_36 = arith.constant 0 : index
      %c0_37 = arith.constant 0 : index
      %62 = vector.load %arg9[%c0_36, %c0_37] : memref<1x32xf32, #tpu.memory_space<vmem>>, vector<1x32xf32>
      tpu.vector_store %arg9[%c0_36, %c0_37], %61 {strides = array<i32>} : memref<1x32xf32, #tpu.memory_space<vmem>>, vector<1x32xf32>,
      %c0_38 = arith.constant 0 : index
      %c0_39 = arith.constant 0 : index
      %63 = vector.load %arg7[%c0_38, %c0_39] : memref<1x32xf32, #tpu.memory_space<vmem>>, vector<1x32xf32>
      %cst_40 = arith.constant 1.000000e-01 : f32
      %64 = vector.broadcast %cst_40 : f32 to vector<1x32xf32>
      %65 = arith.mulf %64, %63 : vector<1x32xf32>
      %cst_41 = arith.constant 0.899999976 : f32
      %66 = vector.broadcast %cst_41 : f32 to vector<1x32xf32>
      %67 = arith.mulf %66, %55 : vector<1x32xf32>
      %68 = arith.addf %65, %67 : vector<1x32xf32>
      %c0_42 = arith.constant 0 : index
      %c0_43 = arith.constant 0 : index
      %69 = vector.load %arg10[%c0_42, %c0_43] : memref<1x32xf32, #tpu.memory_space<vmem>>, vector<1x32xf32>
      tpu.vector_store %arg10[%c0_42, %c0_43], %68 {strides = array<i32>} : memref<1x32xf32, #tpu.memory_space<vmem>>, vector<1x32xf32>,
    } else {
    }
    return
  }
  func.func @transform_0(%arg0: i32, %arg1: i32, %arg2: memref<1xi32, #tpu.memory_space<smem>>) -> (i32, i32) {
    %c0_i32 = arith.constant 0 : i32
    return %arg1, %arg0 : i32, i32
  }
  func.func @transform_1(%arg0: i32, %arg1: i32, %arg2: memref<1xi32, #tpu.memory_space<smem>>) -> (i32, i32) {
    %c0_i32 = arith.constant 0 : i32
    %c0_i32_0 = arith.constant 0 : i32
    return %c0_i32, %arg0 : i32, i32
  }
  func.func @transform_2(%arg0: i32, %arg1: i32, %arg2: memref<1xi32, #tpu.memory_space<smem>>) -> (i32, i32) {
    %c0_i32 = arith.constant 0 : i32
    %c0_i32_0 = arith.constant 0 : i32
    return %c0_i32, %arg0 : i32, i32
  }
  func.func @transform_3(%arg0: i32, %arg1: i32, %arg2: memref<1xi32, #tpu.memory_space<smem>>) -> (i32, i32) {
    %c0_i32 = arith.constant 0 : i32
    %c0_i32_0 = arith.constant 0 : i32
    return %c0_i32, %arg0 : i32, i32
  }
  func.func @transform_4(%arg0: i32, %arg1: i32, %arg2: memref<1xi32, #tpu.memory_space<smem>>) -> (i32, i32) {
    %c0_i32 = arith.constant 0 : i32
    %c0_i32_0 = arith.constant 0 : i32
    return %c0_i32, %arg0 : i32, i32
  }
  func.func @transform_5(%arg0: i32, %arg1: i32, %arg2: memref<1xi32, #tpu.memory_space<smem>>) -> (i32, i32) {
    %c0_i32 = arith.constant 0 : i32
    return %arg1, %arg0 : i32, i32
  }
  func.func @transform_6(%arg0: i32, %arg1: i32, %arg2: memref<1xi32, #tpu.memory_space<smem>>) -> (i32, i32) {
    %c0_i32 = arith.constant 0 : i32
    %c0_i32_0 = arith.constant 0 : i32
    return %c0_i32, %arg0 : i32, i32
  }
  func.func @transform_7(%arg0: i32, %arg1: i32, %arg2: memref<1xi32, #tpu.memory_space<smem>>) -> (i32, i32) {
    %c0_i32 = arith.constant 0 : i32
    %c0_i32_0 = arith.constant 0 : i32
    return %c0_i32, %arg0 : i32, i32
  }
}

</mosaic_0001>

<bundles_post_ra>
// kernel: tpu_custom_call.1
= control target key start
LH: loop header
LB: loop body
LE: loop exit
PB: predicated region body
PF: predicated region fallthrough
CT: control target
= control target key end

     0   :  { %15 = vsyncpa [#allocation8], 0  ;;  %s412_s0 = inlined_call_operand.<no memory space> [shape: s32[1], index: 0, kind: input, shape index: {}]   ;;  %s413_s1 = inlined_call_operand.hbm [shape: f32[8,32], index: 1, kind: input, shape index: {}]   ;;  %s414_s2 = inlined_call_operand.vmem [shape: f32[1,32], index: 2, kind: input, shape index: {}]   ;;  %s415_s3 = inlined_call_operand.vmem [shape: f32[1,32], index: 3, kind: input, shape index: {}]   ;;  %s416_s4 = inlined_call_operand.vmem [shape: f32[1,32], index: 4, kind: input, shape index: {}]   ;;  %s417_s5 = inlined_call_operand.vmem [shape: f32[1,32], index: 5, kind: input, shape index: {}]   ;;  %s418_s6 = inlined_call_operand.hbm [shape: f32[8,32], index: 6, kind: output, shape index: {0}]   ;;  %s419_s7 = inlined_call_operand.hbm [shape: f32[1,32], index: 7, kind: output, shape index: {1}]   ;;  %s420_s8 = inlined_call_operand.hbm [shape: f32[1,32], index: 8, kind: output, shape index: {2}]  }
   0x1   :  { %16 = vsyncpa [#allocation9], 0 }
   0x2   :  { %17 = vsyncpa [#allocation12], 0  ;;  %s286_s27 = smov [#allocation7]   ;;  %s192_s9 = scalar_lea.hbm %s413_s1, 128 }
   0x3   :  { %s24_s28 = sshll.u32 %s286_s27, 4  ;;  %p193_p0 = scmp.ne.s32.totalorder %s413_s1, %s192_s9  ;;  %s25_s28 = int_to_ptr.vmem [resolvable:$true] %s24_s28 }
   0x4   :  { %p196_p1 = scmp.lt.u32.totalorder %s192_s9, %s413_s1 }
   0x6   :  { %p198_p2 = pnand %p196_p1, %p193_p0 }
   0x8   :  { %201 = shalt.err (!%p198_p2)
}
   0x9   :  { %s202_s14 = scalar_lea.vmem %s25_s28, 128  ;;  %p207_p4 = scmp.lt.s32.totalorder %s25_s28, %s25_s28 }
   0xa   :  { %p203_p3 = scmp.ne.s32.totalorder %s25_s28, %s202_s14  ;;  %p208_p5 = scmp.lt.s32.totalorder %s202_s14, %s202_s14 }
   0xc   :  { %p209_p6 = por %p208_p5, %p207_p4 }
   0xe   :  { %p210_p7 = pnand %p209_p6, %p203_p3 }
  0x10   :  { %213 = shalt.err (!%p210_p7)
}
  0x11   :  { %27 = dma.hbm_to_vmem [thread:$0]  %s413_s1, 128, %s25_s28, [#allocation8]  }
  0x12   :  { %280 = dma.done.wait [#allocation8], 128  }
  0x13   :  { %281 = vsyncadd [#allocation8], 4294967168  ;;  %vm57_vm0 = vcmask 261120   ;;  %v287_v0 = vmov 0.0   ;;  %vm63_vm1 = vcmask 253952   ;;  %v40_v1 = vld [vmem:[#allocation7] sm:$0xff]  ;;  %v67_v3 = vlaneseq }
  0x14   :  { %65 = vst.msk [vmem:[#allocation3] sm:$0xff] %vm57_vm0, %v287_v0  ;;  %66 = vst.msk [vmem:[#allocation4] sm:$0xff] %vm57_vm0, %v287_v0  ;;  %v179_v2 = vld [vmem:[%s414_s2] ss:$0 sm:$0xff]  ;;  %s288_s19 = smov [#allocation10]   ;;  %v72_v8 = vstv %s412_s0 }
  0x15   :  { %s143_s20 = sshll.u32 %s288_s19, 4  ;;  %v48_v4 = vmul.f32 %v179_v2, %v40_v1  ;;  %64 = vst.msk [vmem:[#allocation2] sm:$0x1] %vm63_vm1, %v40_v1  ;;  %v180_v5 = vld [vmem:[%s415_s3] ss:$0 sm:$0xff]  ;;  %v68_v7 = vshrl.u32 %v67_v3, 7  ;;  %s144_s20 = int_to_ptr.vmem [resolvable:$true] %s143_s20 }
  0x16   :  { %s214_s2 = scalar_lea.vmem %s144_s20, 128  ;;  %p219_p9 = scmp.lt.s32.totalorder %s144_s20, %s144_s20 }
  0x17   :  { %v56_v6 = vadd.f32 %v180_v5, %v48_v4  ;;  %p215_p8 = scmp.ne.s32.totalorder %s144_s20, %s214_s2  ;;  %p220_p10 = scmp.lt.s32.totalorder %s214_s2, %s214_s2 }
  0x19   :  { %58 = vst.msk [vmem:[#allocation10] sm:$0xff] %vm57_vm0, %v56_v6  ;;  %p221_p11 = por %p220_p10, %p219_p9 }
  0x1b   :  { %p222_p12 = pnand %p221_p11, %p215_p8 }
  0x1d   :  { %225 = shalt.err (!%p222_p12)
}
  0x1e   :  { %s226_s3 = scalar_lea.hbm %s418_s6, 128 }
  0x1f   :  { %p227_p13 = scmp.ne.s32.totalorder %s418_s6, %s226_s3  ;;  %p230_p0 = scmp.lt.u32.totalorder %s226_s3, %s418_s6 }
  0x21   :  { %p232_p1 = pnand %p230_p0, %p227_p13 }
  0x23   :  { %235 = shalt.err (!%p232_p1)
}
  0x24   :  { %146 = dma.vmem_to_hbm [thread:$0]  %s144_s20, 128, %s418_s6, [#allocation9]   ;;  %vm73_vm2 = vcmp.lt.s32.totalorder %v68_v7, %v72_v8  ;;  %v181_v9 = vld [vmem:[#allocation2] ss:$0 sm:$0xff]  ;;  %v85_v11 = vld [vmem:[#allocation3] sm:$0xff]  ;;  %v89_v13 = vld [vmem:[#allocation4] sm:$0xff] }
  0x25   :  { %v81_v10 = vsub.f32 %v40_v1, %v181_v9  ;;  %s113_s12 = scvt.s32.f32 %s412_s0  ;;  %v126_v35 = vld [vmem:[%s416_s4] sm:$0x1]  ;;  %s289_s16 = smov [#allocation11]  }
  0x26   :  { %v114_v38 = vld [vmem:[#allocation2] sm:$0x1]  ;;  %v127_v40 = vmul.f32 0.1, %v126_v35  ;;  %s153_s17 = sshll.u32 %s289_s16, 4  ;;  %s290_s4 = smov [#allocation13]   ;;  %s154_s17 = int_to_ptr.vmem [resolvable:$true] %s153_s17 }
  0x27   :  { %v84_v12 = vsel %vm73_vm2, %v81_v10, 0.0  ;;  %v115_v17 = vstv %s113_s12  ;;  %s182_s6 = sadd.f32 -1.0, %s113_s12  ;;  %v132_v44 = vld [vmem:[%s417_s5] sm:$0x1]  ;;  %s163_s18 = sshll.u32 %s290_s4, 4  ;;  %s164_s18 = int_to_ptr.vmem [resolvable:$true] %s163_s18 }
  0x28   :  { %v90_v14 = vmul.f32 %v84_v12, %v84_v12  ;;  %v87_v15 = vadd.f32 %v85_v11, %v84_v12  ;;  %188 = vrcp.f32 %v115_v17  ;;  %v133_v49 = vmul.f32 0.1, %v132_v44  ;;  %s236_s19 = scalar_lea.vmem %s154_s17, 16  ;;  %s240_s20 = scalar_lea.vmem %s154_s17, 32 }
  0x29   :  { %v123_v25 = vstv %s182_s6  ;;  %p237_p2 = scmp.ne.s32.totalorder %s154_s17, %s236_s19  ;;  %p241_p3 = scmp.lt.s32.totalorder %s154_s17, %s154_s17 }
  0x2a   :  { %88 = vst.msk [vmem:[#allocation3] sm:$0xff] %vm57_vm0, %v87_v15  ;;  %v92_v16 = vadd.f32 %v90_v14, %v89_v13  ;;  %190 = vrcp.f32 %v123_v25  ;;  %p242_p4 = scmp.lt.s32.totalorder %s240_s20, %s236_s19 }
  0x2c   :  { %93 = vst.msk [vmem:[#allocation4] sm:$0xff] %vm57_vm0, %v92_v16  ;;  %p243_p5 = por %p242_p4, %p241_p3 }
  0x2e   :  { %p244_p6 = pnand %p243_p5, %p237_p2 }
  0x31   :  { %v97_v18 = vld [vmem:[#allocation3] sm:$0xff] }
  0x32   :  { %v98_v19 = vsel %vm57_vm0, %v97_v18, 0.0  ;;  %v189_v32 = vpop.eup %188 }
  0x33   :  { %v99_v20 = vrot.slane %v98_v19, 4  ;;  %v105_v21 = vld [vmem:[#allocation4] sm:$0xff] }
  0x34   :  { %v106_v22 = vsel %vm57_vm0, %v105_v21, 0.0  ;;  %v191_v43 = vpop.eup %190 }
  0x35   :  { %v100_v23 = vadd.f32 %v99_v20, %v98_v19  ;;  %v107_v24 = vrot.slane %v106_v22, 4 }
  0x37   :  { %v101_v26 = vrot.slane %v100_v23, 2  ;;  %v108_v27 = vadd.f32 %v107_v24, %v106_v22 }
  0x39   :  { %v102_v28 = vadd.f32 %v101_v26, %v100_v23  ;;  %v109_v29 = vrot.slane %v108_v27, 2 }
  0x3b   :  { %v103_v30 = vrot.slane %v102_v28, 1  ;;  %v110_v31 = vadd.f32 %v109_v29, %v108_v27 }
  0x3d   :  { %v104_v33 = vadd.f32 %v103_v30, %v102_v28  ;;  %v111_v34 = vrot.slane %v110_v31, 1 }
  0x3f   :  { %v117_v36 = vmul.f32 %v189_v32, %v104_v33  ;;  %v119_v37 = vmul.f32 %v104_v33, %v104_v33  ;;  %v112_v41 = vadd.f32 %v111_v34, %v110_v31 }
  0x41   :  { %v118_v39 = vadd.f32 %v117_v36, %v114_v38  ;;  %v120_v42 = vmul.f32 %v189_v32, %v119_v37 }
  0x43   :  { %v128_v45 = vmul.f32 0.9, %v118_v39  ;;  %v121_v46 = vsub.f32 %v112_v41, %v120_v42 }
  0x45   :  { %v129_v47 = vadd.f32 %v128_v45, %v127_v40  ;;  %v125_v48 = vmul.f32 %v191_v43, %v121_v46 }
  0x47   :  { %131 = vst.msk [vmem:[#allocation11] sm:$0x1] %vm63_vm1, %v129_v47  ;;  %v134_v50 = vmul.f32 0.9, %v125_v48 }
  0x48   :  { %247 = shalt.err (!%p244_p6)
}
  0x49   :  { %s248_s21 = scalar_lea.hbm %s419_s7, 16 }
  0x4a   :  { %p249_p7 = scmp.ne.s32.totalorder %s419_s7, %s248_s21  ;;  %p252_p8 = scmp.lt.u32.totalorder %s248_s21, %s419_s7 }
  0x4c   :  { %p254_p9 = pnand %p252_p8, %p249_p7 }
  0x4e   :  { %257 = shalt.err (!%p254_p9)
}
  0x4f   :  { %156 = dma.vmem_to_hbm [thread:$0]  %s154_s17, 16, %s419_s7, [#allocation12]   ;;  %v135_v51 = vadd.f32 %v134_v50, %v133_v49 }
  0x50   :  { %s258_s26 = scalar_lea.vmem %s164_s18, 16  ;;  %s262_s27 = scalar_lea.vmem %s164_s18, 32 }
  0x51   :  { %136 = vst.msk [vmem:[#allocation13] sm:$0x1] %vm63_vm1, %v135_v51  ;;  %p259_p10 = scmp.ne.s32.totalorder %s164_s18, %s258_s26  ;;  %p263_p11 = scmp.lt.s32.totalorder %s164_s18, %s164_s18 }
  0x52   :  { %p264_p12 = scmp.lt.s32.totalorder %s262_s27, %s258_s26 }
  0x54   :  { %p265_p13 = por %p264_p12, %p263_p11 }
  0x56   :  { %p266_p0 = pnand %p265_p13, %p259_p10 }
  0x58   :  { %269 = shalt.err (!%p266_p0)
}
  0x59   :  { %s270_s30 = scalar_lea.hbm %s420_s8, 16 }
  0x5a   :  { %p271_p1 = scmp.ne.s32.totalorder %s420_s8, %s270_s30  ;;  %p274_p2 = scmp.lt.u32.totalorder %s270_s30, %s420_s8 }
  0x5c   :  { %p276_p3 = pnand %p274_p2, %p271_p1 }
  0x5e   :  { %279 = shalt.err (!%p276_p3)
}
  0x5f   :  { %166 = dma.vmem_to_hbm [thread:$0]  %s164_s18, 16, %s420_s8, [#allocation12]  }
  0x60   :  { %282 = dma.done.wait [#allocation9], 128  }
  0x61   :  { %283 = vsyncadd [#allocation9], 4294967168 }
  0x62   :  { %284 = dma.done.wait [#allocation12], 32  }
  0x63   :  { %285 = vsyncadd [#allocation12], 4294967264 }
  0x64   :  { %176 = vsyncpa [#allocation8], 1 }
  0x65   :  { %177 = vsyncpa [#allocation9], 1 }
  0x66   :  { %178 = vsyncpa [#allocation12], 1 }

</bundles_post_ra>
